<compile_context>
chip_gen: v7x
topology: tpu7x:2x2x1
jax: 0.10.0
libtpu: 0.0.40
codegen_flags: <defaults>
</compile_context>

<pallas_src>
import functools
import math

import jax
import jax.numpy as jnp
from jax.experimental import pallas as pl
from jax.experimental.pallas import tpu as pltpu


# ------------------------------ hardware info ------------------------------ #

def _vmem_capacity_bytes():
    try:
        return int(pltpu.get_tpu_info().vmem_capacity_bytes)
    except Exception:
        return 64 * 1024 * 1024        # conservative default (v7x per-TC VMEM)


# ------------------------------ kernel helpers ------------------------------ #

def _lane_dense_mean(a, inv_s):
    """Mean over the trailing (spatial) axis of a (1, C, S) f32 value.

    Bulk of the reduction is 128-lane-wide VPU adds; only the final
    (1, C, 128) -> (1, C) step uses the XLU lane reduce."""
    S = a.shape[-1]
    if S > 128 and S % 128 == 0:
        acc = a[:, :, 0:128]
        for i in range(1, S // 128):
            acc = acc + a[:, :, i * 128:(i + 1) * 128]
    else:
        acc = a
    return jnp.sum(acc, axis=-1) * inv_s          # (1, C)


def _sigmoid(z):
    # Exact form (EUP exp + divide); keeps the 1e-5 tolerance vs the reference.
    return 1.0 / (1.0 + jnp.exp(-z))


# ------------------------------ Pallas kernels ------------------------------ #

def _fused_kernel(x_ref, g_ref, wx_ref, bx_ref, wg_ref, bg_ref, o_ref, *,
                  inv_sx, inv_sg):
    """One batch per grid step: means, MLP + sigmoid, scale*x + ReLU, one store."""
    x_raw = x_ref[...]                                        # (1, Cx, Sx)
    xf = x_raw.astype(jnp.float32)
    gf = g_ref[...].astype(jnp.float32)                       # (1, Cg, Sg)

    px = _lane_dense_mean(xf, inv_sx)                         # (1, Cx) f32
    pg = _lane_dense_mean(gf, inv_sg)                         # (1, Cg) f32

    att_x = jnp.dot(px, wx_ref[...],
                    preferred_element_type=jnp.float32) + bx_ref[...]
    att_g = jnp.dot(pg, wg_ref[...],
                    preferred_element_type=jnp.float32) + bg_ref[...]
    scale = _sigmoid(0.5 * (att_x + att_g))                   # (1, Cx) f32

    # Apply natively in the input dtype (bf16 stays bf16 on v6e/v7x).
    s_b = scale[:, :, None].astype(x_raw.dtype)
    o_ref[...] = jnp.maximum(x_raw * s_b, 0.0).astype(o_ref.dtype)


def _mean_kernel(a_ref, o_ref, acc_ref, *, inv_s):
    """Grid-axis spatial reduction with a lane-dense (1, C, 128) f32 accumulator."""
    s = pl.program_id(1)

    @pl.when(s == 0)
    def _():
        acc_ref[...] = jnp.zeros_like(acc_ref)

    a = a_ref[...].astype(jnp.float32)                        # (1, C, T), T % 128 == 0
    part = a[:, :, 0:128]
    for i in range(1, a.shape[-1] // 128):                    # VPU chunk adds
        part = part + a[:, :, i * 128:(i + 1) * 128]
    acc_ref[...] += part

    @pl.when(s == pl.num_programs(1) - 1)
    def _():
        o_ref[...] = jnp.sum(acc_ref[...], axis=-1, keepdims=True) * inv_s


def _scale_relu_kernel(x_ref, s_ref, o_ref):
    """out = relu(x * scale); scale broadcasts along the spatial (lane) axis."""
    x = x_ref[...]                                            # (1, C, T)
    o_ref[...] = jnp.maximum(x * s_ref[...].astype(x.dtype), 0.0).astype(o_ref.dtype)


# -------------------------------- wrappers ---------------------------------- #

def _pick_spatial_tile(S, bytes_per_spatial_elem, budget_bytes):
    """Largest multiple-of-128 divisor of S whose block fits the byte budget.
    Caller guarantees S % 128 == 0 (spatial axes are padded beforehand)."""
    assert S % 128 == 0
    best = 128
    t = 128
    while t <= S:
        if S % t == 0 and t * bytes_per_spatial_elem <= budget_bytes:
            best = t
        t += 128
    return best


def _pad_to_128(a):
    """Zero-pad the trailing (spatial) axis to a multiple of 128."""
    S = a.shape[-1]
    pad = (-S) % 128
    if pad:
        a = jnp.pad(a, ((0, 0), (0, 0), (0, pad)))
    return a, S


def _global_mean_tiled(a, budget_bytes):
    """(N, C, S) -> (N, C) per-(batch, channel) spatial mean, tiled & pipelined."""
    N, C, _ = a.shape
    a_p, S_true = _pad_to_128(a)          # zero pad is harmless: divide by true S
    Sp = a_p.shape[-1]
    tile = _pick_spatial_tile(Sp, C * a_p.dtype.itemsize, budget_bytes)
    out = pl.pallas_call(
        functools.partial(_mean_kernel, inv_s=1.0 / S_true),
        out_shape=jax.ShapeDtypeStruct((N, C, 1), jnp.float32),
        grid=(N, Sp // tile),
        in_specs=[pl.BlockSpec((1, C, tile), lambda n, s: (n, 0, s))],
        out_specs=pl.BlockSpec((1, C, 1), lambda n, s: (n, 0, 0)),
        scratch_shapes=[pltpu.VMEM((1, C, 128), jnp.float32)],
        compiler_params=pltpu.CompilerParams(
            dimension_semantics=("parallel", "arbitrary")),
    )(a_p)
    return out.reshape(N, C)


def _scale_relu_tiled(xs, scale, budget_bytes):
    """relu(x * scale) tiled over (batch, spatial). xs: (N, C, S), scale: (N, C)."""
    N, C, S = xs.shape
    x_p, _ = _pad_to_128(xs)
    Sp = x_p.shape[-1]
    tile = _pick_spatial_tile(Sp, 2 * C * x_p.dtype.itemsize, budget_bytes)
    s3 = scale.reshape(N, C, 1).astype(jnp.float32)
    out = pl.pallas_call(
        _scale_relu_kernel,
        out_shape=jax.ShapeDtypeStruct((N, C, Sp), xs.dtype),
        grid=(N, Sp // tile),
        in_specs=[pl.BlockSpec((1, C, tile), lambda n, s: (n, 0, s)),
                  pl.BlockSpec((1, C, 1), lambda n, s: (n, 0, 0))],
        out_specs=pl.BlockSpec((1, C, tile), lambda n, s: (n, 0, s)),
        compiler_params=pltpu.CompilerParams(
            dimension_semantics=("parallel", "parallel")),
    )(x_p, s3)
    return out[:, :, :S]


def channel_forward(g, x, params):
    """Channel.forward: g, x in NCHW; returns relu(x * sigmoid(channel_att))."""
    wx_t, bx, wg_t, bg = params            # weights stored pre-transposed (in, out)
    N, Cx, H, W = x.shape
    Ng, Cg, Hg, Wg = g.shape
    assert N == Ng
    Sx, Sg = H * W, Hg * Wg
    xs = x.reshape(N, Cx, Sx)              # merge spatial dims; layout stays NCHW
    gs = g.reshape(N, Cg, Sg)
    bx2 = bx.reshape(1, Cx)
    bg2 = bg.reshape(1, Cx)

    vmem_cap = _vmem_capacity_bytes()
    small_vmem = vmem_cap < 100 * 1024 * 1024            # v7x: 64 MiB per TC

    # Bytes resident per fused grid step (double-buffered x-in, g-in, out slabs).
    itemsize = x.dtype.itemsize
    fused_bytes = 2 * (Cx * Sx + Cg * Sg + Cx * Sx) * itemsize
    fused_budget = (20 if small_vmem else 48) * 1024 * 1024

    if fused_bytes <= fused_budget:
        # ---- fully fused: x read once, g read once, out written once ---- #
        vmem_limit = None
        if fused_bytes > 12 * 1024 * 1024:               # above safe default -> raise
            vmem_limit = min(int(0.75 * vmem_cap), fused_bytes + (8 << 20))
        out = pl.pallas_call(
            functools.partial(_fused_kernel, inv_sx=1.0 / Sx, inv_sg=1.0 / Sg),
            out_shape=jax.ShapeDtypeStruct((N, Cx, Sx), x.dtype),
            grid=(N,),
            in_specs=[pl.BlockSpec((1, Cx, Sx), lambda n: (n, 0, 0)),
                      pl.BlockSpec((1, Cg, Sg), lambda n: (n, 0, 0)),
                      pl.BlockSpec((Cx, Cx), lambda n: (0, 0)),
                      pl.BlockSpec((1, Cx), lambda n: (0, 0)),
                      pl.BlockSpec((Cg, Cx), lambda n: (0, 0)),
                      pl.BlockSpec((1, Cx), lambda n: (0, 0))],
            out_specs=pl.BlockSpec((1, Cx, Sx), lambda n: (n, 0, 0)),
            compiler_params=pltpu.CompilerParams(
                dimension_semantics=("parallel",),
                vmem_limit_bytes=vmem_limit),
        )(xs, gs, wx_t, bx2, wg_t, bg2)
        return out.reshape(N, Cx, H, W)

    # ---- tiled fallback for feature maps too large to keep resident ---- #
    # TODO(synk): mask the last spatial tile instead of zero-padding to avoid the
    # padded-copy HBM traffic on very large, non-128-aligned feature maps.
    tile_budget = (4 if small_vmem else 8) * 1024 * 1024
    px = _global_mean_tiled(xs, tile_budget)             # x read once
    pg = _global_mean_tiled(gs, tile_budget)             # g read once
    att = 0.5 * ((px @ wx_t) + bx2 + (pg @ wg_t) + bg2)  # tiny; plain JAX, no launch
    scale = jax.nn.sigmoid(att)                          # (N, Cx)
    out = _scale_relu_tiled(xs, scale, tile_budget)      # x read again, out written
    return out.reshape(N, Cx, H, W)


# ------------------------- deterministic parameters ------------------------- #

def init_params(key, f_g, f_x):
    """nn.Linear-style init for mlp_x = Linear(F_x, F_x), mlp_g = Linear(F_g, F_x).

    Weights are stored PRE-TRANSPOSED as (in_features, out_features) so the
    forward is `p @ w_t` with no per-call transpose / HBM copy."""
    k1, k2, k3, k4 = jax.random.split(key, 4)
    bx_bound = 1.0 / math.sqrt(f_x)
    bg_bound = 1.0 / math.sqrt(f_g)
    wx_t = jax.random.uniform(k1, (f_x, f_x), jnp.float32, -bx_bound, bx_bound)
    bx = jax.random.uniform(k2, (f_x,), jnp.float32, -bx_bound, bx_bound)
    wg_t = jax.random.uniform(k3, (f_g, f_x), jnp.float32, -bg_bound, bg_bound)
    bg = jax.random.uniform(k4, (f_x,), jnp.float32, -bg_bound, bg_bound)
    return wx_t, bx, wg_t, bg


def channel_forward_ref(g, x, params):
    """Pure-JAX reference of the PyTorch forward (for correctness check)."""
    wx_t, bx, wg_t, bg = params
    px = jnp.mean(x, axis=(2, 3))
    pg = jnp.mean(g, axis=(2, 3))
    att = 0.5 * ((px @ wx_t + bx) + (pg @ wg_t + bg))
    scale = jax.nn.sigmoid(att)[:, :, None, None]
    return jnp.maximum(x * scale, 0.0)


# ----------------------------------- main ----------------------------------- #

if __name__ == "__main__":
    key = jax.random.PRNGKey(0)
    kg, kx, kp = jax.random.split(key, 3)

    # Channel(F_g=64, F_x=32): g = gating features, x = skip features (NCHW).
    N, F_g, F_x, H, W = 2, 64, 32, 16, 16
    g = jax.random.normal(kg, (N, F_g, H, W), dtype=jnp.float32)
    x = jax.random.normal(kx, (N, F_x, H, W), dtype=jnp.float32)
    params = init_params(kp, F_g, F_x)

    out = jax.block_until_ready(channel_forward(g, x, params))
    ref = jax.block_until_ready(channel_forward_ref(g, x, params))

    assert out.shape == (N, F_x, H, W), out.shape
    assert bool(jnp.all(jnp.isfinite(out)))
    assert bool(jnp.all(out >= 0.0))                       # ReLU output
    assert bool(jnp.allclose(out, ref, rtol=1e-5, atol=1e-5)), \
        float(jnp.max(jnp.abs(out - ref)))

    print("KERNEL_OK")
</pallas_src>

<mosaic_0001>
module attributes {stable_mosaic.version = 11 : i64} {
  func.func @_fused_kernel(%arg0: i32, %arg1: memref<1x32x256xf32, #tpu.memory_space<vmem>>, %arg2: memref<1x64x256xf32, #tpu.memory_space<vmem>>, %arg3: memref<32x32xf32, #tpu.memory_space<vmem>>, %arg4: memref<1x32xf32, #tpu.memory_space<vmem>>, %arg5: memref<64x32xf32, #tpu.memory_space<vmem>>, %arg6: memref<1x32xf32, #tpu.memory_space<vmem>>, %arg7: memref<1x32x256xf32, #tpu.memory_space<vmem>>) attributes {dimension_semantics = [#tpu.dimension_semantics<parallel>], iteration_bounds = array<i64: 2>, scalar_prefetch = 0 : i64, scratch_operands = 0 : i64, tpu.core_type = #tpu.core_type<tc>, window_params = [{transform_indices = @transform_0, window_bounds = array<i64: 1, 32, 256>}, {transform_indices = @transform_1, window_bounds = array<i64: 1, 64, 256>}, {pipeline_mode = #tpu.pipeline_mode<synchronous>, transform_indices = @transform_2, window_bounds = array<i64: 32, 32>}, {pipeline_mode = #tpu.pipeline_mode<synchronous>, transform_indices = @transform_3, window_bounds = array<i64: 1, 32>}, {pipeline_mode = #tpu.pipeline_mode<synchronous>, transform_indices = @transform_4, window_bounds = array<i64: 64, 32>}, {pipeline_mode = #tpu.pipeline_mode<synchronous>, transform_indices = @transform_5, window_bounds = array<i64: 1, 32>}, {transform_indices = @transform_6, window_bounds = array<i64: 1, 32, 256>}]} {
    %c0 = arith.constant 0 : index
    %c0_0 = arith.constant 0 : index
    %c0_1 = arith.constant 0 : index
    %0 = vector.load %arg1[%c0, %c0_0, %c0_1] : memref<1x32x256xf32, #tpu.memory_space<vmem>>, vector<1x32x256xf32>
    %c0_2 = arith.constant 0 : index
    %c0_3 = arith.constant 0 : index
    %c0_4 = arith.constant 0 : index
    %1 = vector.load %arg2[%c0_2, %c0_3, %c0_4] : memref<1x64x256xf32, #tpu.memory_space<vmem>>, vector<1x64x256xf32>
    %2 = vector.extract_strided_slice %0 {offsets = [0, 0, 0], sizes = [1, 32, 128], strides = [1, 1, 1]} : vector<1x32x256xf32> to vector<1x32x128xf32>
    %3 = vector.extract_strided_slice %0 {offsets = [0, 0, 128], sizes = [1, 32, 128], strides = [1, 1, 1]} : vector<1x32x256xf32> to vector<1x32x128xf32>
    %4 = arith.addf %2, %3 : vector<1x32x128xf32>
    %cst = arith.constant dense<0.000000e+00> : vector<1x32xf32>
    %5 = vector.multi_reduction <add>, %4, %cst [2] : vector<1x32x128xf32> to vector<1x32xf32>
    %cst_5 = arith.constant 3.906250e-03 : f32
    %6 = vector.broadcast %cst_5 : f32 to vector<1x32xf32>
    %7 = arith.mulf %5, %6 : vector<1x32xf32>
    %8 = vector.extract_strided_slice %1 {offsets = [0, 0, 0], sizes = [1, 64, 128], strides = [1, 1, 1]} : vector<1x64x256xf32> to vector<1x64x128xf32>
    %9 = vector.extract_strided_slice %1 {offsets = [0, 0, 128], sizes = [1, 64, 128], strides = [1, 1, 1]} : vector<1x64x256xf32> to vector<1x64x128xf32>
    %10 = arith.addf %8, %9 : vector<1x64x128xf32>
    %cst_6 = arith.constant dense<0.000000e+00> : vector<1x64xf32>
    %11 = vector.multi_reduction <add>, %10, %cst_6 [2] : vector<1x64x128xf32> to vector<1x64xf32>
    %cst_7 = arith.constant 3.906250e-03 : f32
    %12 = vector.broadcast %cst_7 : f32 to vector<1x64xf32>
    %13 = arith.mulf %11, %12 : vector<1x64xf32>
    %c0_8 = arith.constant 0 : index
    %c0_9 = arith.constant 0 : index
    %14 = vector.load %arg3[%c0_8, %c0_9] : memref<32x32xf32, #tpu.memory_space<vmem>>, vector<32x32xf32>
    %cst_10 = arith.constant dense<0.000000e+00> : vector<1x32xf32>
    %15 = tpu.matmul %7, %14, %cst_10 {dimension_numbers = #tpu.dot_dimension_numbers<[1], [0], [0], [1], [0, 0, 1, 1], [], []>} : vector<1x32xf32>, vector<32x32xf32>, vector<1x32xf32> -> vector<1x32xf32>
    %c0_11 = arith.constant 0 : index
    %c0_12 = arith.constant 0 : index
    %16 = vector.load %arg4[%c0_11, %c0_12] : memref<1x32xf32, #tpu.memory_space<vmem>>, vector<1x32xf32>
    %17 = arith.addf %15, %16 : vector<1x32xf32>
    %c0_13 = arith.constant 0 : index
    %c0_14 = arith.constant 0 : index
    %18 = vector.load %arg5[%c0_13, %c0_14] : memref<64x32xf32, #tpu.memory_space<vmem>>, vector<64x32xf32>
    %cst_15 = arith.constant dense<0.000000e+00> : vector<1x32xf32>
    %19 = tpu.matmul %13, %18, %cst_15 {dimension_numbers = #tpu.dot_dimension_numbers<[1], [0], [0], [1], [0, 0, 1, 1], [], []>} : vector<1x64xf32>, vector<64x32xf32>, vector<1x32xf32> -> vector<1x32xf32>
    %c0_16 = arith.constant 0 : index
    %c0_17 = arith.constant 0 : index
    %20 = vector.load %arg6[%c0_16, %c0_17] : memref<1x32xf32, #tpu.memory_space<vmem>>, vector<1x32xf32>
    %21 = arith.addf %19, %20 : vector<1x32xf32>
    %22 = arith.addf %17, %21 : vector<1x32xf32>
    %cst_18 = arith.constant 5.000000e-01 : f32
    %23 = vector.broadcast %cst_18 : f32 to vector<1x32xf32>
    %24 = arith.mulf %23, %22 : vector<1x32xf32>
    %cst_19 = arith.constant 0.000000e+00 : f32
    %25 = vector.broadcast %cst_19 : f32 to vector<1x32xf32>
    %26 = arith.subf %25, %24 : vector<1x32xf32>
    %27 = math.exp %26 : vector<1x32xf32>
    %cst_20 = arith.constant 1.000000e+00 : f32
    %28 = vector.broadcast %cst_20 : f32 to vector<1x32xf32>
    %29 = arith.addf %28, %27 : vector<1x32xf32>
    %cst_21 = arith.constant 1.000000e+00 : f32
    %30 = vector.broadcast %cst_21 : f32 to vector<1x32xf32>
    %31 = arith.divf %30, %29 : vector<1x32xf32>
    %32 = vector.shape_cast %31 : vector<1x32xf32> to vector<1x32x1xf32>
    %33 = vector.broadcast %32 : vector<1x32x1xf32> to vector<1x32x256xf32>
    %34 = arith.mulf %0, %33 : vector<1x32x256xf32>
    %cst_22 = arith.constant 0.000000e+00 : f32
    %35 = vector.broadcast %cst_22 : f32 to vector<1x32x256xf32>
    %36 = arith.maximumf %34, %35 : vector<1x32x256xf32>
    %c0_23 = arith.constant 0 : index
    %c0_24 = arith.constant 0 : index
    %c0_25 = arith.constant 0 : index
    %37 = vector.load %arg7[%c0_23, %c0_24, %c0_25] : memref<1x32x256xf32, #tpu.memory_space<vmem>>, vector<1x32x256xf32>
    tpu.vector_store %arg7[%c0_23, %c0_24, %c0_25], %36 {strides = array<i32>} : memref<1x32x256xf32, #tpu.memory_space<vmem>>, vector<1x32x256xf32>,
    return
  }
  func.func @transform_0(%arg0: i32) -> (i32, i32, i32) {
    %c0_i32 = arith.constant 0 : i32
    %c0_i32_0 = arith.constant 0 : i32
    %c0_i32_1 = arith.constant 0 : i32
    return %arg0, %c0_i32, %c0_i32_0 : i32, i32, i32
  }
  func.func @transform_1(%arg0: i32) -> (i32, i32, i32) {
    %c0_i32 = arith.constant 0 : i32
    %c0_i32_0 = arith.constant 0 : i32
    %c0_i32_1 = arith.constant 0 : i32
    return %arg0, %c0_i32, %c0_i32_0 : i32, i32, i32
  }
  func.func @transform_2(%arg0: i32) -> (i32, i32) {
    %c0_i32 = arith.constant 0 : i32
    %c0_i32_0 = arith.constant 0 : i32
    %c0_i32_1 = arith.constant 0 : i32
    return %c0_i32, %c0_i32_0 : i32, i32
  }
  func.func @transform_3(%arg0: i32) -> (i32, i32) {
    %c0_i32 = arith.constant 0 : i32
    %c0_i32_0 = arith.constant 0 : i32
    %c0_i32_1 = arith.constant 0 : i32
    return %c0_i32, %c0_i32_0 : i32, i32
  }
  func.func @transform_4(%arg0: i32) -> (i32, i32) {
    %c0_i32 = arith.constant 0 : i32
    %c0_i32_0 = arith.constant 0 : i32
    %c0_i32_1 = arith.constant 0 : i32
    return %c0_i32, %c0_i32_0 : i32, i32
  }
  func.func @transform_5(%arg0: i32) -> (i32, i32) {
    %c0_i32 = arith.constant 0 : i32
    %c0_i32_0 = arith.constant 0 : i32
    %c0_i32_1 = arith.constant 0 : i32
    return %c0_i32, %c0_i32_0 : i32, i32
  }
  func.func @transform_6(%arg0: i32) -> (i32, i32, i32) {
    %c0_i32 = arith.constant 0 : i32
    %c0_i32_0 = arith.constant 0 : i32
    %c0_i32_1 = arith.constant 0 : i32
    return %arg0, %c0_i32, %c0_i32_0 : i32, i32, i32
  }
}

</mosaic_0001>

<bundles_post_ra>
// kernel: tpu_custom_call.1
= control target key start
LH: loop header
LB: loop body
LE: loop exit
PB: predicated region body
PF: predicated region fallthrough
CT: control target
= control target key end

     0   :  { %s1457_s0 = inlined_call_operand.hbm [shape: f32[2,32,256], index: 0, kind: input, shape index: {}]   ;;  %s1458_s1 = inlined_call_operand.hbm [shape: f32[2,64,256], index: 1, kind: input, shape index: {}]   ;;  %s1459_s2 = inlined_call_operand.vmem [shape: f32[32,32], index: 2, kind: input, shape index: {}]   ;;  %s1460_s3 = inlined_call_operand.vmem [shape: f32[1,32], index: 3, kind: input, shape index: {}]   ;;  %s1461_s4 = inlined_call_operand.vmem [shape: f32[64,32], index: 4, kind: input, shape index: {}]   ;;  %s1462_s5 = inlined_call_operand.vmem [shape: f32[1,32], index: 5, kind: input, shape index: {}]   ;;  %s1463_s6 = inlined_call_operand.hbm [shape: f32[2,32,256], index: 6, kind: output, shape index: {}]  }
   0x1   :  { %1466 = sst [smem:[#allocation11_spill]] %s1457_s0 }
   0x2   :  { %11 = vsyncpa [#allocation3], 0 }
   0x3   :  { %13 = vsyncpa [#allocation3 + $0x1], 0 }
   0x4   :  { %14 = vsyncpa [#allocation6], 0 }
   0x5   :  { %16 = vsyncpa [#allocation6 + $0x1], 0 }
   0x6   :  { %17 = vsyncpa [#allocation4], 0 }
   0x7   :  { %19 = vsyncpa [#allocation4 + $0x1], 0  ;;  %s1116_s21 = smov 0   ;;  %s1118_s22 = smov 0  }
   0x8   :  { %s1120_s23 = smov 0   ;;  %s1122_s24 = smov 0  }
   0x9 LB: > { %s1137_s25 = sadd.s32 4294967295, %s1069_s24   ;;  %s789_s26 = sadd.s32 4294967294, %s1069_s24   ;;  %s1069_s24 = sphi %s1122_s24, %s1481_s24   ;;  %s1065_s23 = sphi %s1120_s23, %s1480_s23   ;;  %s1061_s22 = sphi %s1118_s22, %s1479_s22   ;;  %s1057_s21 = sphi %s1116_s21, %s1478_s21  }
   0xa   : > { %s1141_s27 = sadd.s32 1, %s1069_s24   ;;  %s32_s28 = sadd.s32 1, %s1065_s23 }
   0xb   : > { %s29_s29 = ssub.s32 %s1069_s24, %s1141_s27  ;;  %p39_p0 = scmp.ne.s32.totalorder %s1065_s23, %s1061_s22 }
   0xc   : > { %p30_p1 = scmp.eq.s32.totalorder %s29_s29, 0  ;;  %p40_p2 = scmp.eq.s32.totalorder %s1069_s24, 0 }
   0xd   : > { %p45_p3 = scmp.ne.s32.totalorder %s1061_s22, %s1057_s21  ;;  %p46_p4 = scmp.eq.s32.totalorder %s1137_s25, 0 }
   0xe   : > { %s1153_s30 = scalar_select %p30_p1, %s1065_s23, %s32_s28  }
   0xf   : > { %p1155_p5 = por %p40_p2, %p39_p0  ;;  %p1159_p6 = por %p46_p4, %p45_p3 }
  0x10   : > { %p179_p7 = scmp.eq.s32.totalorder %s1137_s25, 1  ;;  %p185_p8 = scmp.eq.s32.totalorder %s789_s26, 1 }
  0x11   : > { %s1468_s8 = scalar_select %p1159_p6, 1, 0 }
  0x12   : > { %p894_p10 = scmp.lt.s32.totalorder %s1069_s24, 2  ;;  %p1166_p11 = por %p179_p7, %p39_p0 }
  0x13   : > { %p1170_p12 = por %p185_p8, %p45_p3  ;;  %s1175_s11 = sand.u32 1, %s1065_s23  }
  0x14   : > { %s1469_s9 = scalar_select %p1166_p11, 1, 0 }
  0x15   : > { %s1470_s10 = scalar_select %p1170_p12, 1, 0 }
  0x16   : > { %s809_s12 = sshll.u32 %s1069_s24, 10  ;;  %s792_s13 = sshll.u32 %s1175_s11, 6 }
  0x17   : > { %s1471_s0 = sld [smem:[#allocation11_spill]]  ;;  %s221_s17 = scalar_lea.vmem [#allocation2], %s792_s13 }
  0x18   : > { %s228_s18 = sshll.u32 %s221_s17, 4  ;;  %p1186_p13 = pnand %p894_p10, %p1155_p5  ;;  %s1190_s18 = int_to_ptr.vmem [resolvable:$true] %s228_s18 }
  0x19   : > { %s218_s20 = scalar_lea.sflag [#allocation3], %s1175_s11 }
  0x1a   : > { %p941_p1 = pneg %p1186_p13 }
  0x1d   : > { %s1182_s16 = scalar_lea.hbm %s1471_s0, %s809_s12  ;;  %s944_s7 = scalar_lea.hbm %s1471_s0, 2048 }
  0x1e   : > { %s939_s26 = scalar_lea.hbm %s1182_s16, 1024  ;;  %p945_p4 = scmp.lt.u32.totalorder %s1182_s16, %s1471_s0 }
  0x1f   : > { %p940_p0 = scmp.ne.s32.totalorder %s1182_s16, %s939_s26  ;;  %p946_p5 = scmp.lt.u32.totalorder %s944_s7, %s939_s26 }
  0x20   : > { %p948_p8 = scmp.lt.u32.totalorder %s939_s26, %s1182_s16 }
  0x21   : > { %p942_p2 = pnand %p941_p1, %p940_p0  ;;  %p947_p7 = por %p946_p5, %p945_p4 }
  0x23   : > { %p943_p3 = pneg %p942_p2  ;;  %p949_p10 = por %p948_p8, %p947_p7 }
  0x25   : > { %p950_p9 = pnand %p949_p10, %p943_p3 }
  0x27   : > { %953 = shalt.err (!%p950_p9)
}
  0x28   : > { %s954_s14 = scalar_lea.vmem %s1190_s18, 1024  ;;  %s1071_s15 = smov [#allocation2]  }
  0x29   : > { %p955_p0 = scmp.ne.s32.totalorder %s1190_s18, %s954_s14  ;;  %s959_s17 = sshll.u32 %s1071_s15, 4  ;;  %s960_s17 = int_to_ptr.vmem [resolvable:$false] %s959_s17 }
  0x2a   : > { %s961_s28 = scalar_lea.vmem %s960_s17, 2048  ;;  %p962_p11 = scmp.lt.s32.totalorder %s1190_s18, %s960_s17 }
  0x2b   : > { %p957_p2 = pnand %p955_p0, %p941_p1  ;;  %p963_p4 = scmp.lt.s32.totalorder %s961_s28, %s954_s14 }
  0x2d   : > { %p958_p12 = pneg %p957_p2  ;;  %p964_p5 = por %p963_p4, %p962_p11 }
  0x2f   : > { %p965_p7 = pnand %p964_p5, %p958_p12 }
  0x31   : > { %968 = shalt.err (!%p965_p7)
}
  0x32   : > { %s1072_s26 = smov 256   ;;  %s1073_s29 = smov 16  }
  0x33   : > { %886 = dma.hbm_to_vmem [thread:$0]  (!%p1186_p13), %s1182_s16, 1024, %s1190_s18, %s218_s20, %s1072_s26, %s1072_s26, %s1073_s29  }
  0x34   : > { %p798_p9 = scmp.ge.s32.totalorder %s1069_s24, 1  ;;  %p257_p11 = scmp.lt.s32.totalorder %s1069_s24, 3 }
  0x35   : > { %s795_s7 = sshll.u32 %s1175_s11, 7  ;;  %s810_s13 = sshll.u32 %s1069_s24, 11 }
  0x36   : > { %p1226_p12 = pnand %p798_p9, %p257_p11  ;;  %s242_s14 = scalar_lea.vmem [#allocation5], %s795_s7 }
  0x37   : > { %s249_s15 = sshll.u32 %s242_s14, 4  ;;  %s1234_s0 = scalar_lea.hbm %s1458_s1, %s810_s13  ;;  %s1236_s15 = int_to_ptr.vmem [resolvable:$true] %s249_s15 }
  0x38   : > { %s239_s16 = scalar_lea.sflag [#allocation6], %s1175_s11  ;;  %s969_s18 = scalar_lea.hbm %s1234_s0, 2048 }
  0x39   : > { %p970_p3 = scmp.ne.s32.totalorder %s1234_s0, %s969_s18  ;;  %s974_s14 = scalar_lea.hbm %s1458_s1, 4096 }
  0x3a   : > { %p975_p0 = scmp.lt.u32.totalorder %s1234_s0, %s1458_s1  ;;  %p976_p2 = scmp.lt.u32.totalorder %s974_s14, %s969_s18 }
  0x3b   : > { %p972_p8 = pnand %p970_p3, %p941_p1  ;;  %p978_p5 = scmp.lt.u32.totalorder %s969_s18, %s1234_s0 }
  0x3c   : > { %p977_p4 = por %p976_p2, %p975_p0 }
  0x3d   : > { %p973_p10 = pneg %p972_p8 }
  0x3e   : > { %p979_p7 = por %p978_p5, %p977_p4 }
  0x40   : > { %p980_p9 = pnand %p979_p7, %p973_p10 }
  0x42   : > { %983 = shalt.err (!%p980_p9)
}
  0x43   : > { %s984_s28 = scalar_lea.vmem %s1236_s15, 2048  ;;  %s1074_s20 = smov [#allocation5]  }
  0x44   : > { %p985_p11 = scmp.ne.s32.totalorder %s1236_s15, %s984_s28  ;;  %s989_s7 = sshll.u32 %s1074_s20, 4  ;;  %s990_s7 = int_to_ptr.vmem [resolvable:$false] %s989_s7 }
  0x45   : > { %s991_s17 = scalar_lea.vmem %s990_s7, 4096  ;;  %p992_p6 = scmp.lt.s32.totalorder %s1236_s15, %s990_s7 }
  0x46   : > { %p987_p3 = pnand %p985_p11, %p941_p1  ;;  %p993_p0 = scmp.lt.s32.totalorder %s991_s17, %s984_s28 }
  0x48   : > { %p988_p8 = pneg %p987_p3  ;;  %p994_p2 = por %p993_p0, %p992_p6 }
  0x4a   : > { %p995_p4 = pnand %p994_p2, %p988_p8 }
  0x4c   : > { %998 = shalt.err (!%p995_p4)
}
  0x4d   : > { %889 = dma.hbm_to_vmem [thread:$0]  (!%p1186_p13), %s1234_s0, 2048, %s1236_s15, %s239_s16, %s1072_s26, %s1072_s26, %s1073_s29  }
  0x4e   : > { %261 = sbr.rel (%p1226_p12) target bundleno = 649 (0x289), region = 44  ;;  %s1270_s18 = sand.u32 (!%p1226_p12), 1, %s1061_s22  }
  0x4f   : > { %s799_s14 = sshll.u32 (!%p1226_p12), %s1270_s18, 6  ;;  %s264_s19 = scalar_lea.sflag (!%p1226_p12), [#allocation3], %s1270_s18 }
  0x50   : > { %s1276_s13 = scalar_lea.vmem (!%p1226_p12), [#allocation2], %s799_s14  ;;  %p1474_p6 = scmp.ne.s32.totalorder (!%p1226_p12), %s1468_s8, 0 }
  0x55   : > { %1044 = dma.done.wait (%p1474_p6), %s264_s19, 1024  }
  0x56   : > { %1046 = vsyncadd (%p1474_p6), %s264_s19, 4294966272  ;;  %s800_s0 = sshll.u32 %s1270_s18, 7  ;;  %s273_s11 = scalar_lea.sflag [#allocation6], %s1270_s18 }
  0x57   : > { %s1284_s26 = scalar_lea.vmem [#allocation5], %s800_s0 }
  0x58   : > { %1048 = dma.done.wait (%p1474_p6), %s273_s11, 2048  }
  0x59   : > { %1050 = vsyncadd (%p1474_p6), %s273_s11, 4294965248  ;;  %v318_v0 = vld [vmem:[%s1284_s26] sm:$0xff]  ;;  %v319_v1 = vld [vmem:[%s1284_s26 + $0x8] sm:$0xff]  ;;  %v1075_v41 = vmov 0.0|0.0   ;;  %vm1076_vm0 = vmmov 0   ;;  %v1077_v49 = vmov 0.0   ;;  %v391_v56 = vlaneseq }
  0x5a   : > { %v1293_v2 = vld [vmem:[%s1276_s13] sm:$0xff]  ;;  %v350_v3 = vadd.f32 %v319_v1, %v318_v0  ;;  %v1296_v4 = vld [vmem:[%s1276_s13 + $0x8] sm:$0xff]  ;;  %v320_v5 = vld [vmem:[%s1284_s26 + $0x10] sm:$0xff]  ;;  %856 = vmatprep.subr.bf16.mxu1 %v1075_v41  ;;  %862 = vmatprep.subr.bf16.mxu0 %v1075_v41  ;;  %vm402_vm1 = vcmask 130112   ;;  %vm409_vm2 = vcmask 195712   ;;  %vm416_vm3 = vcmask 261312  }
  0x5b   : > { %v321_v6 = vld [vmem:[%s1284_s26 + $0x18] sm:$0xff]  ;;  %v334_v7 = vadd.f32 %v1296_v4, %v1293_v2  ;;  %v1303_v8 = vld [vmem:[%s1276_s13 + $0x10] sm:$0xff]  ;;  %v322_v12 = vld [vmem:[%s1284_s26 + $0x20] sm:$0xff]  ;;  %834 = vmatprep.mubr.msk.f32.mxu1 %vm1076_vm0, %v1077_v49  ;;  %853 = vmatprep.mubr.msk.f32.mxu0 %vm1076_vm0, %v1077_v49  ;;  %v392_v59 = vand.u32 127, %v391_v56  ;;  %v1374_v0 = vshrl.u32 %v391_v56, 7  ;;  %vm418_vm4 = vcmask 261120  }
  0x5c   : > { %v1306_v9 = vld [vmem:[%s1276_s13 + $0x18] sm:$0xff]  ;;  %358 = vadd.xlane.f32.xlu1 %v350_v3  ;;  %v351_v10 = vadd.f32 %v321_v6, %v320_v5  ;;  %v323_v13 = vld [vmem:[%s1284_s26 + $0x28] sm:$0xff]  ;;  %v1313_v14 = vld [vmem:[%s1276_s13 + $0x20] sm:$0xff]  ;;  %vm532_vm5 = vcmask 326912   ;;  %vm539_vm6 = vcmask 392512   ;;  %vm546_vm7 = vcmask 458112  }
  0x5d   : > { %338 = vadd.xlane.f32.xlu0 %v334_v7  ;;  %v335_v11 = vadd.f32 %v1306_v9, %v1303_v8  ;;  %v1316_v15 = vld [vmem:[%s1276_s13 + $0x28] sm:$0xff]  ;;  %v352_v16 = vadd.f32 %v323_v13, %v322_v12  ;;  %v324_v18 = vld [vmem:[%s1284_s26 + $0x30] sm:$0xff]  ;;  %v325_v19 = vld [vmem:[%s1284_s26 + $0x38] sm:$0xff]  ;;  %v397_v60 = vadd.s32 4294967288, %v392_v59  ;;  %v404_v63 = vadd.s32 4294967280, %v392_v59  ;;  %s309_s8 = scalar_lea.vmem [#allocation7], %s799_s14 }
  0x5e   : > { %v336_v17 = vadd.f32 %v1316_v15, %v1313_v14  ;;  %v1323_v20 = vld [vmem:[%s1276_s13 + $0x30] sm:$0xff]  ;;  %v1326_v21 = vld [vmem:[%s1276_s13 + $0x38] sm:$0xff]  ;;  %v353_v22 = vadd.f32 %v325_v19, %v324_v18  ;;  %v326_v26 = vld [vmem:[%s1284_s26 + $0x40] sm:$0xff]  ;;  %v411_v6 = vadd.s32 4294967272, %v392_v59  ;;  %v534_v18 = vadd.s32 4294967256, %v392_v59  ;;  %s693_s29 = sshll.u32 %s309_s8, 4  ;;  %s1406_s29 = int_to_ptr.vmem [resolvable:$true] %s693_s29 }
  0x5f   : > { %v337_v23 = vadd.f32 %v1326_v21, %v1323_v20  ;;  %v328_v24 = vld [vmem:[%s1284_s26 + $0x50] sm:$0xff]  ;;  %v329_v25 = vld [vmem:[%s1284_s26 + $0x58] sm:$0xff]  ;;  %v327_v27 = vld [vmem:[%s1284_s26 + $0x48] sm:$0xff]  ;;  %v400_v1 = vsub.s32 %v397_v60, %v1374_v0  ;;  %v407_v7 = vsub.s32 %v404_v63, %v1374_v0  ;;  %vm553_vm8 = vcmask 523712   ;;  %s811_s12 = sshll.u32 %s1137_s25, 10  ;;  %s680_s25 = scalar_lea.sflag [#allocation4], %s1270_s18 }
  0x60   : > { %360 = vadd.xlane.f32.xlu1 %v351_v10  ;;  %v355_v28 = vadd.f32 %v329_v25, %v328_v24  ;;  %v354_v29 = vadd.f32 %v327_v27, %v326_v26  ;;  %v332_v30 = vld [vmem:[%s1284_s26 + $0x70] sm:$0xff]  ;;  %v333_v31 = vld [vmem:[%s1284_s26 + $0x78] sm:$0xff]  ;;  %v330_v32 = vld [vmem:[%s1284_s26 + $0x60] sm:$0xff]  ;;  %vm555_vm9 = vcmask 523264   ;;  %s1413_s16 = scalar_lea.hbm %s1463_s6, %s811_s12  ;;  %s999_s28 = scalar_lea.vmem %s1406_s29, 1024 }
  0x61   : > { %340 = vadd.xlane.f32.xlu0 %v335_v11  ;;  %v331_v33 = vld [vmem:[%s1284_s26 + $0x68] sm:$0xff]  ;;  %v357_v34 = vadd.f32 %v333_v31, %v332_v30  ;;  %v382_v36 = vld [vmem:[%s1459_s2] sm:$0xff]  ;;  %v384_v43 = vld [vmem:[%s1459_s2 + $0x10] sm:$0xff]  ;;  %v395_v11 = vsub.s32 %v392_v59, %v1374_v0  ;;  %p1000_p13 = scmp.ne.s32.totalorder %s1406_s29, %s999_s28  ;;  %p1475_p1 = scmp.ne.s32.totalorder %s1469_s9, 0 }
  0x62   : > { %v356_v35 = vadd.f32 %v331_v33, %v330_v32  ;;  %v383_v37 = vld [vmem:[%s1459_s2 + $0x8] sm:$0xff]  ;;  %v491_v39 = vld [vmem:[%s1461_s4] sm:$0xff]  ;;  %v385_v44 = vld [vmem:[%s1459_s2 + $0x18] sm:$0xff]  ;;  %v537_v33 = vsub.s32 %v534_v18, %v1374_v0  ;;  %s1078_s20 = smov [#allocation7]  }
  0x63   : > { %v857_v38 = vpack.c.bf16 %v383_v37, %v382_v36  ;;  %v492_v40 = vld [vmem:[%s1461_s4 + $0x8] sm:$0xff]  ;;  %v860_v45 = vpack.c.bf16 %v385_v44, %v384_v43  ;;  %v493_v46 = vld [vmem:[%s1461_s4 + $0x10] sm:$0xff]  ;;  %v494_v47 = vld [vmem:[%s1461_s4 + $0x18] sm:$0xff]  ;;  %p1001_p12 = pnand %p1000_p13, %p1475_p1  ;;  %s1003_s7 = sshll.u32 %s1078_s20, 4  ;;  %s1004_s7 = int_to_ptr.vmem [resolvable:$false] %s1003_s7 }
  0x64   : > { %362 = vadd.xlane.f32.xlu1 %v352_v16  ;;  %v863_v42 = vpack.c.bf16 %v492_v40, %v491_v39  ;;  %v866_v48 = vpack.c.bf16 %v494_v47, %v493_v46  ;;  %v495_v50 = vld [vmem:[%s1461_s4 + $0x20] sm:$0xff]  ;;  %v496_v51 = vld [vmem:[%s1461_s4 + $0x28] sm:$0xff]  ;;  %v497_v53 = vld [vmem:[%s1461_s4 + $0x30] sm:$0xff]  ;;  %v527_v16 = vadd.s32 4294967264, %v392_v59  ;;  %v541_v39 = vadd.s32 4294967248, %v392_v59  ;;  %s1005_s17 = scalar_lea.vmem %s1004_s7, 2048  ;;  %p1006_p5 = scmp.lt.s32.totalorder %s1406_s29, %s1004_s7 }
  0x65   : > { %342 = vadd.xlane.f32.xlu0 %v336_v17  ;;  %858 = vmatpush3.bf16.msra.mxu1 %v857_v38  ;;  %v869_v52 = vpack.c.bf16 %v496_v51, %v495_v50  ;;  %v498_v54 = vld [vmem:[%s1461_s4 + $0x38] sm:$0xff]  ;;  %p1002_p10 = pneg %p1001_p12  ;;  %p1007_p7 = scmp.lt.s32.totalorder %s1005_s17, %s999_s28 }
  0x66   : > { %864 = vmatpush3.bf16.msra.mxu0 %v863_v42  ;;  %859 = vmatprep.subr.bf16.mxu1 %v1075_v41  ;;  %v872_v55 = vpack.c.bf16 %v498_v54, %v497_v53  ;;  %v530_v31 = vsub.s32 %v527_v16, %v1374_v0  ;;  %v544_v51 = vsub.s32 %v541_v39, %v1374_v0 }
  0x67   : > { %865 = vmatprep.subr.bf16.mxu0 %v1075_v41  ;;  %p1008_p9 = por %p1007_p7, %p1006_p5 }
  0x68   : > { %364 = vadd.xlane.f32.xlu1 %v353_v22 }
  0x69   : > { %344 = vadd.xlane.f32.xlu0 %v337_v23  ;;  %861 = vmatpush3.bf16.msra.mxu1 %v860_v45  ;;  %v414_v23 = vsub.s32 %v411_v6, %v1374_v0  ;;  %p1009_p11 = pnand %p1008_p9, %p1002_p10 }
  0x6a   : > { %867 = vmatpush3.bf16.msra.mxu0 %v866_v48 }
  0x6b   : > { %868 = vmatprep.subr.bf16.mxu0 %v1075_v41 }
  0x6c   : > { %368 = vadd.xlane.f32.xlu1 %v355_v28 }
  0x6d   : > { %366 = vadd.xlane.f32.xlu0 %v354_v29 }
  0x6e   : > { %870 = vmatpush3.bf16.msra.mxu0 %v869_v52 }
  0x6f   : > { %871 = vmatprep.subr.bf16.mxu0 %v1075_v41 }
  0x70   : > { %372 = vadd.xlane.f32.xlu1 %v357_v34  ;;  %v548_v34 = vadd.s32 4294967240, %v392_v59 }
  0x71   : > { %370 = vadd.xlane.f32.xlu0 %v356_v35 }
  0x72   : > { %873 = vmatpush3.bf16.msra.mxu0 %v872_v55  ;;  %v551_v48 = vsub.s32 %v548_v34, %v1374_v0 }
  0xe9   : > { %v359_v57 = vpop.xlane.xlu1 %358 }
  0xea   : > { %v339_v58 = vpop.xlane.xlu0 %338  ;;  %v374_v25 = vmul.f32 0.00390625, %v359_v57 }
  0xeb   : > { %v346_v12 = vmul.f32 0.00390625, %v339_v58 }
  0xec   : > { %v511_v40 = vrot.slane %v374_v25, %v395_v11 }
  0xed   : > { %v361_v61 = vpop.xlane.xlu1 %360  ;;  %v396_v29 = vrot.slane %v346_v12, %v395_v11 }
  0xee   : > { %v341_v62 = vpop.xlane.xlu0 %340  ;;  %v375_v17 = vmul.f32 0.00390625, %v361_v61 }
  0xef   : > { %v347_v3 = vmul.f32 0.00390625, %v341_v62 }
  0xf0   : > { %v515_v32 = vrot.slane %v375_v17, %v400_v1 }
  0xf1   : > { %v363_v5 = vpop.xlane.xlu1 %362  ;;  %v401_v19 = vrot.slane %v347_v3, %v400_v1  ;;  %v386_v3 = vld [vmem:[%s1460_s3] sm:$0x1] }
  0xf2   : > { %v343_v10 = vpop.xlane.xlu0 %342  ;;  %v376_v22 = vmul.f32 0.00390625, %v363_v5  ;;  %v516_v47 = vsel %vm402_vm1, %v515_v32, %v511_v40 }
  0xf3   : > { %v348_v13 = vmul.f32 0.00390625, %v343_v10  ;;  %v403_v35 = vsel %vm402_vm1, %v401_v19, %v396_v29 }
  0xf4   : > { %v520_v36 = vrot.slane %v376_v22, %v407_v7 }
  0xf5   : > { %v365_v24 = vpop.xlane.xlu1 %364  ;;  %v408_v26 = vrot.slane %v348_v13, %v407_v7  ;;  %v499_v7 = vld [vmem:[%s1462_s5] sm:$0x1] }
  0xf6   : > { %v377_v27 = vmul.f32 0.00390625, %v365_v24  ;;  %v345_v28 = vpop.xlane.xlu0 %344  ;;  %v521_v49 = vsel %vm409_vm2, %v520_v36, %v516_v47 }
  0xf7   : > { %v349_v30 = vmul.f32 0.00390625, %v345_v28  ;;  %v410_v44 = vsel %vm409_vm2, %v408_v26, %v403_v35 }
  0xf8   : > { %v525_v41 = vrot.slane %v377_v27, %v414_v23 }
  0xf9   : > { %v415_v37 = vrot.slane %v349_v30, %v414_v23  ;;  %v369_v38 = vpop.xlane.xlu1 %368  ;;  %v638_v23 = vsub.s32 0, %v1374_v0 }
  0xfa   : > { %v367_v42 = vpop.xlane.xlu0 %366  ;;  %v379_v43 = vmul.f32 0.00390625, %v369_v38  ;;  %v526_v54 = vsel %vm416_vm3, %v525_v41, %v521_v49 }
  0xfb   : > { %v378_v45 = vmul.f32 0.00390625, %v367_v42  ;;  %v417_v46 = vsel %vm416_vm3, %v415_v37, %v410_v44 }
  0xfc   : > { %835 = vmatmul.mubr.msk.f32.vlgmr.msra.gmra.mrb[0].mxu1 %vm418_vm4, %v417_v46  ;;  %v538_v53 = vrot.slane %v379_v43, %v537_v33 }
  0xfd   : > { %v531_v50 = vrot.slane %v378_v45, %v530_v31  ;;  %v373_v52 = vpop.xlane.xlu1 %372 }
  0xfe   : > { %v371_v55 = vpop.xlane.xlu0 %370  ;;  %v381_v56 = vmul.f32 0.00390625, %v373_v52 }
  0xff   : > { %v380_v57 = vmul.f32 0.00390625, %v371_v55  ;;  %v533_v58 = vsel %vm532_vm5, %v531_v50, %v526_v54 }
 0x100   : > { %v552_v59 = vrot.slane %v381_v56, %v551_v48  ;;  %v540_v61 = vsel %vm539_vm6, %v538_v53, %v533_v58 }
 0x101   : > { %v545_v60 = vrot.slane %v380_v57, %v544_v51 }
 0x103   : > { %v547_v62 = vsel %vm546_vm7, %v545_v60, %v540_v61 }
 0x104   : > { %v554_v63 = vsel %vm553_vm8, %v552_v59, %v547_v62 }
 0x105   : > { %854 = vmatmul.mubr.msk.f32.vlgmr.msra.gmra.mrb[0].mxu0 %vm555_vm9, %v554_v63 }
 0x1cf   : > { %v487_v1 = vpop.f32.mrb[0].mxu1 }
 0x1d0   : > { %v836_v5 = vpop.f32.mrb[1].mxu1  ;;  %v488_v6 = vadd.f32 %v487_v1, %v386_v3 }
 0x1d2   : > { %v875_v10 = vadd.f32 %v499_v7, %v488_v6 }
 0x1d8   : > { %v624_v11 = vpop.f32.mrb[0].mxu0 }
 0x1d9   : > { %v876_v12 = vadd.f32 %v875_v10, %v624_v11  ;;  %v855_v13 = vpop.f32.mrb[1].mxu0 }
 0x1db   : > { %v629_v16 = vmul.f32 0.5, %v876_v12 }
 0x1dd   : > { %v630_v17 = vsub.f32 0.0, %v629_v16 }
 0x1df   : > { %v631_v18 = vmul.f32 1.442695, %v630_v17 }
 0x1e1   : > { %935 = vpow2.f32 %v631_v18 }
 0x1eb   : > { %v936_v19 = vpop.eup %935 }
 0x1ec   : > { %v633_v22 = vadd.f32 1.0, %v936_v19 }
 0x1ee   : > { %937 = vrcp.f32 %v633_v22 }
 0x1f8   : > { %v938_v24 = vpop.eup %937 }
 0x1f9   : > { %v639_v25 = vrot.slane %v938_v24, %v638_v23 }
 0x1fb   : > { %645 = vbcast.lane.b32.xlu1 %v639_v25, 264  ;;  %641 = vbcast.lane.b32.xlu0 %v639_v25, 256 }
 0x1ff   : > { %649 = vbcast.lane.b32.xlu1 %v639_v25, 272 }
 0x203   : > { %653 = vbcast.lane.b32.xlu1 %v639_v25, 280 }
 0x26d   : > { %v646_v26 = vpop.permute.xlu1 %645  ;;  %v642_v27 = vpop.permute.xlu0 %641 }
 0x26e   : > { %v657_v28 = vmul.f32 %v646_v26, %v1303_v8  ;;  %v658_v29 = vmul.f32 %v646_v26, %v1306_v9  ;;  %v655_v30 = vmul.f32 %v642_v27, %v1293_v2  ;;  %v656_v31 = vmul.f32 %v642_v27, %v1296_v4 }
 0x270   : > { %v665_v32 = vmax.f32 %v657_v28, 0.0  ;;  %v666_v0 = vmax.f32 %v658_v29, 0.0  ;;  %v663_v33 = vmax.f32 %v655_v30, 0.0  ;;  %v664_v34 = vmax.f32 %v656_v31, 0.0 }
 0x271   : > { %v650_v35 = vpop.permute.xlu1 %649 }
 0x272   : > { %673 = vst [vmem:[%s309_s8 + $0x10] sm:$0xff] %v665_v32  ;;  %674 = vst [vmem:[%s309_s8 + $0x18] sm:$0xff] %v666_v0  ;;  %v659_v8 = vmul.f32 %v650_v35, %v1313_v14  ;;  %v660_v9 = vmul.f32 %v650_v35, %v1316_v15 }
 0x273   : > { %671 = vst [vmem:[%s309_s8] sm:$0xff] %v663_v33  ;;  %672 = vst [vmem:[%s309_s8 + $0x8] sm:$0xff] %v664_v34 }
 0x274   : > { %v667_v2 = vmax.f32 %v659_v8, 0.0  ;;  %v668_v4 = vmax.f32 %v660_v9, 0.0 }
 0x275   : > { %v654_v36 = vpop.permute.xlu1 %653 }
 0x276   : > { %675 = vst [vmem:[%s309_s8 + $0x20] sm:$0xff] %v667_v2  ;;  %676 = vst [vmem:[%s309_s8 + $0x28] sm:$0xff] %v668_v4  ;;  %v661_v37 = vmul.f32 %v654_v36, %v1323_v20  ;;  %v662_v14 = vmul.f32 %v654_v36, %v1326_v21 }
 0x278   : > { %v669_v15 = vmax.f32 %v661_v37, 0.0  ;;  %v670_v38 = vmax.f32 %v662_v14, 0.0 }
 0x27a   : > { %677 = vst [vmem:[%s309_s8 + $0x30] sm:$0xff] %v669_v15  ;;  %678 = vst [vmem:[%s309_s8 + $0x38] sm:$0xff] %v670_v38 }
 0x27b   : > { %1012 = shalt.err (!%p1009_p11)
}
 0x27c   : > { %s1013_s19 = scalar_lea.hbm %s1413_s16, 1024  ;;  %s1017_s11 = scalar_lea.hbm %s1463_s6, 2048 }
 0x27d   : > { %p1014_p3 = scmp.ne.s32.totalorder %s1413_s16, %s1013_s19  ;;  %p1018_p2 = scmp.lt.u32.totalorder %s1413_s16, %s1463_s6 }
 0x27e   : > { %p1019_p4 = scmp.lt.u32.totalorder %s1017_s11, %s1013_s19  ;;  %p1021_p13 = scmp.lt.u32.totalorder %s1013_s19, %s1413_s16 }
 0x27f   : > { %p1015_p8 = pnand %p1014_p3, %p1475_p1 }
 0x280   : > { %p1020_p6 = por %p1019_p4, %p1018_p2 }
 0x281   : > { %p1016_p0 = pneg %p1015_p8 }
 0x282   : > { %p1022_p12 = por %p1021_p13, %p1020_p6 }
 0x284   : > { %p1023_p10 = pnand %p1022_p12, %p1016_p0 }
 0x286   : > { %1026 = shalt.err (!%p1023_p10)
}
 0x287   : > { %s1079_s12 = smov 256   ;;  %s1080_s14 = smov 16  }
 0x288   : > { %881 = dma.vmem_to_hbm [thread:$0]  (%p1475_p1), %s1406_s29, 1024, %s1413_s16, %s680_s25, %s1079_s12, %s1079_s12, %s1080_s14  }
 0x289 PF: > { %s708_s15 = sand.u32 1, %s1057_s21   ;;  %p1476_p5 = scmp.ne.s32.totalorder %s1470_s10, 0 }
 0x28a   : > { %p1477_p7 = scmp.ge.s32.totalorder %s1069_s24, 2  ;;  %s709_s28 = scalar_lea.sflag [#allocation4], %s708_s15 }
 0x28c   : > { %p891_p9 = pnand %p1477_p7, %p1476_p5 }
 0x28e   : > { %1052 = dma.done.wait (!%p891_p9), %s709_s28, 1024  }
 0x28f   : > { %1054 = vsyncadd (!%p891_p9), %s709_s28, 4294966272  ;;  %p22_p11 = scmp.ge.s32.totalorder %s1141_s27, 4   ;;  %s1478_s21 = smov %s1061_s22 }
 0x290   : > { %s1479_s22 = smov %s1065_s23  ;;  %s1480_s23 = smov %s1153_s30 }
 0x291   : > { %s1481_s24 = smov %s1141_s27  ;;  %24 = sbr.rel (!%p22_p11) target bundleno = 9 (0x9), region = 102 }
 0x298   :  { %714 = vsyncpa [#allocation3], 1 }
 0x299   :  { %716 = vsyncpa [#allocation3 + $0x1], 1 }
 0x29a   :  { %717 = vsyncpa [#allocation6], 1 }
 0x29b   :  { %719 = vsyncpa [#allocation6 + $0x1], 1 }
 0x29c   :  { %720 = vsyncpa [#allocation4], 1 }
 0x29d   :  { %722 = vsyncpa [#allocation4 + $0x1], 1 }

</bundles_post_ra>
